<compile_context>
chip_gen: v7x
topology: tpu7x:2x2x1
jax: 0.10.0
libtpu: 0.0.40
codegen_flags: <defaults>
</compile_context>

<pallas_src>
import jax
import jax.numpy as jnp
from jax.experimental import pallas as pl
from jax.experimental.pallas import tpu as pltpu


def _round_up(x, m):
    return (x + m - 1) // m * m


def _pick_batch_tile(B):
    # Largest power-of-two tile (<=512, >=8) dividing B; else the whole batch.
    for t in (512, 256, 128, 64, 32, 16, 8):
        if B % t == 0:
            return t
    return B


# ----------------------------------------------------------------------------
# Kernel: one batch tile, everything resident in VMEM.
# ----------------------------------------------------------------------------
def _make_kernel(action_dim, H0, H1, H2, b_offsets):
    o0, o1, o2, o3 = b_offsets
    A = action_dim

    def kernel(state_ref, act_ref, w0s_ref, w0a_ref, w1_ref, w2_ref,
               whead_ref, bpack_ref, q_ref):
        # Biases, sliced out of the single packed operand (static, 128-aligned).
        b0 = bpack_ref[:, o0:o0 + H0]
        b1 = bpack_ref[:, o1:o1 + H1]
        b2 = bpack_ref[:, o2:o2 + H2]
        bh = bpack_ref[:, o3:o3 + A + 1]

        # Layer 0 with the concat fused in: [state|action] @ w0 + b0.
        x = jnp.dot(state_ref[...], w0s_ref[...],
                    preferred_element_type=jnp.float32)
        x = x + jnp.dot(act_ref[...], w0a_ref[...],
                        preferred_element_type=jnp.float32)
        x = jnp.maximum(x + b0, 0.0)

        # Remaining trunk layers: Linear -> ReLU.
        x = jnp.maximum(
            jnp.dot(x, w1_ref[...], preferred_element_type=jnp.float32) + b1, 0.0)
        x = jnp.maximum(
            jnp.dot(x, w2_ref[...], preferred_element_type=jnp.float32) + b2, 0.0)

        # Fused dueling head: one (H2, A+1) matmul, then slice adv / val.
        head = jnp.dot(x, whead_ref[...],
                       preferred_element_type=jnp.float32) + bh
        adv = head[:, :A]
        val = head[:, A:A + 1]
        q_ref[...] = val + adv - jnp.mean(adv, axis=1, keepdims=True)

    return kernel


# ----------------------------------------------------------------------------
# Wrapper
# ----------------------------------------------------------------------------
def pack_params(params, state_dim):
    """Fuse / pack raw (in,out)-layout params for the kernel (done once)."""
    w0s = params["w0"][:state_dim]          # (state_dim, H0)
    w0a = params["w0"][state_dim:]          # (action_dim, H0)
    whead = jnp.concatenate([params["wadv"], params["wval"]], axis=1)  # (H2, A+1)

    segs = [params["b0"], params["b1"], params["b2"],
            jnp.concatenate([params["badv"], params["bval"]], axis=1)]
    offsets, padded, cur = [], [], 0
    for s in segs:
        offsets.append(cur)
        width = _round_up(s.shape[1], 128)     # keep segment starts 128-aligned
        padded.append(jnp.pad(s, ((0, 0), (0, width - s.shape[1]))))
        cur += width
    bpack = jnp.concatenate(padded, axis=1)    # (1, total_padded)

    fused = dict(w0s=w0s, w0a=w0a, w1=params["w1"], w2=params["w2"],
                 whead=whead, bpack=bpack)
    return fused, tuple(offsets)


def dueling_dqn_forward(state, action_params, fused, b_offsets):
    B, state_dim = state.shape
    action_dim = action_params.shape[1]
    A = action_dim
    H0 = fused["w0s"].shape[1]
    H1 = fused["w1"].shape[1]
    H2 = fused["w2"].shape[1]

    tile_b = _pick_batch_tile(B)
    grid = (B // tile_b,)

    kernel = _make_kernel(action_dim, H0, H1, H2, b_offsets)

    const = lambda i: (0, 0)   # weights stay VMEM-resident across the batch grid
    batch = lambda i: (i, 0)

    flops = 2 * B * (state_dim * H0 + action_dim * H0
                     + H0 * H1 + H1 * H2 + H2 * (A + 1))
    bytes_accessed = 4 * (B * (state_dim + action_dim)
                          + (state_dim + action_dim) * H0
                          + H0 * H1 + H1 * H2 + H2 * (A + 1)
                          + fused["bpack"].shape[1] + B * A)

    q = pl.pallas_call(
        kernel,
        out_shape=jax.ShapeDtypeStruct((B, A), jnp.float32),
        grid_spec=pltpu.PrefetchScalarGridSpec(
            num_scalar_prefetch=0,
            grid=grid,
            in_specs=[
                pl.BlockSpec((tile_b, state_dim), batch),
                pl.BlockSpec((tile_b, action_dim), batch),
                pl.BlockSpec(fused["w0s"].shape, const),
                pl.BlockSpec(fused["w0a"].shape, const),
                pl.BlockSpec(fused["w1"].shape, const),
                pl.BlockSpec(fused["w2"].shape, const),
                pl.BlockSpec(fused["whead"].shape, const),
                pl.BlockSpec(fused["bpack"].shape, const),
            ],
            out_specs=pl.BlockSpec((tile_b, A), batch),
        ),
        compiler_params=pltpu.CompilerParams(
            dimension_semantics=("parallel",)),
        cost_estimate=pl.CostEstimate(
            flops=flops, transcendentals=0, bytes_accessed=bytes_accessed),
    )(state, action_params, fused["w0s"], fused["w0a"], fused["w1"],
      fused["w2"], fused["whead"], fused["bpack"])

    # Reference forward uses adv_layers_1 / val_layers_1 for BOTH branches, so
    # q_duel1 == q_duel2; return the same array twice (no duplicate output DMA).
    return q, q


# ----------------------------------------------------------------------------
# Deterministic init matching the PyTorch module:
#   kaiming_normal_ on Linear weights (std = sqrt(2 / fan_in)), zero biases.
# Weights stored transposed as (in, out); biases as (1, out).
# ----------------------------------------------------------------------------
def init_params(key, state_dim, action_dim, hidden_layers=(256, 128, 64)):
    dims = [state_dim + action_dim, *hidden_layers]
    params = {}
    keys = jax.random.split(key, len(hidden_layers) + 2)

    for i in range(len(hidden_layers)):
        fan_in, fan_out = dims[i], dims[i + 1]
        std = (2.0 / fan_in) ** 0.5
        params[f"w{i}"] = (std * jax.random.normal(keys[i], (fan_in, fan_out))
                           ).astype(jnp.float32)
        params[f"b{i}"] = jnp.zeros((1, fan_out), jnp.float32)

    h_last = hidden_layers[-1]
    std = (2.0 / h_last) ** 0.5
    params["wadv"] = (std * jax.random.normal(keys[-2], (h_last, action_dim))
                      ).astype(jnp.float32)
    params["badv"] = jnp.zeros((1, action_dim), jnp.float32)
    params["wval"] = (std * jax.random.normal(keys[-1], (h_last, 1))
                      ).astype(jnp.float32)
    params["bval"] = jnp.zeros((1, 1), jnp.float32)
    # TODO(synk): adv_layers_2 / val_layers_2 exist in __init__ but are unused
    # in forward(); they are intentionally not materialized here.
    return params


if __name__ == "__main__":
    B, state_dim, action_dim = 2, 8, 4

    key = jax.random.PRNGKey(0)
    k_state, k_action, k_params = jax.random.split(key, 3)

    state = jax.random.normal(k_state, (B, state_dim), dtype=jnp.float32)
    action_params = jax.random.normal(k_action, (B, action_dim), dtype=jnp.float32)
    params = init_params(k_params, state_dim, action_dim)
    fused, b_offsets = pack_params(params, state_dim)

    q1, q2 = dueling_dqn_forward(state, action_params, fused, b_offsets)
    jax.block_until_ready((q1, q2))

    # Pure-JAX reference check (mirrors the PyTorch forward).
    temp = jnp.concatenate([state, action_params], axis=1)
    x = temp
    for i in range(3):
        x = jnp.maximum(x @ params[f"w{i}"] + params[f"b{i}"], 0.0)
    adv = x @ params["wadv"] + params["badv"]
    val = x @ params["wval"] + params["bval"]
    q_ref = val + adv - adv.mean(axis=1, keepdims=True)

    assert q1.shape == (B, action_dim) and q2.shape == (B, action_dim)
    assert bool(jnp.all(jnp.isfinite(q1))) and bool(jnp.all(jnp.isfinite(q2)))
    assert bool(jnp.allclose(q1, q_ref, atol=1e-3, rtol=1e-3))
    assert bool(jnp.allclose(q2, q_ref, atol=1e-3, rtol=1e-3))
    print("KERNEL_OK")
</pallas_src>

<mosaic_0001>
module attributes {stable_mosaic.version = 11 : i64} {
  func.func @kernel(%arg0: i32, %arg1: memref<2x8xf32, #tpu.memory_space<vmem>>, %arg2: memref<2x4xf32, #tpu.memory_space<vmem>>, %arg3: memref<8x256xf32, #tpu.memory_space<vmem>>, %arg4: memref<4x256xf32, #tpu.memory_space<vmem>>, %arg5: memref<256x128xf32, #tpu.memory_space<vmem>>, %arg6: memref<128x64xf32, #tpu.memory_space<vmem>>, %arg7: memref<64x5xf32, #tpu.memory_space<vmem>>, %arg8: memref<1x640xf32, #tpu.memory_space<vmem>>, %arg9: memref<2x4xf32, #tpu.memory_space<vmem>>) attributes {dimension_semantics = [#tpu.dimension_semantics<parallel>], iteration_bounds = array<i64: 1>, scalar_prefetch = 0 : i64, scratch_operands = 0 : i64, tpu.core_type = #tpu.core_type<tc>, window_params = [{transform_indices = @transform_0, window_bounds = array<i64: 2, 8>}, {transform_indices = @transform_1, window_bounds = array<i64: 2, 4>}, {pipeline_mode = #tpu.pipeline_mode<synchronous>, transform_indices = @transform_2, window_bounds = array<i64: 8, 256>}, {pipeline_mode = #tpu.pipeline_mode<synchronous>, transform_indices = @transform_3, window_bounds = array<i64: 4, 256>}, {pipeline_mode = #tpu.pipeline_mode<synchronous>, transform_indices = @transform_4, window_bounds = array<i64: 256, 128>}, {pipeline_mode = #tpu.pipeline_mode<synchronous>, transform_indices = @transform_5, window_bounds = array<i64: 128, 64>}, {pipeline_mode = #tpu.pipeline_mode<synchronous>, transform_indices = @transform_6, window_bounds = array<i64: 64, 5>}, {pipeline_mode = #tpu.pipeline_mode<synchronous>, transform_indices = @transform_7, window_bounds = array<i64: 1, 640>}, {transform_indices = @transform_8, window_bounds = array<i64: 2, 4>}]} {
    %c0 = arith.constant 0 : index
    %c0_0 = arith.constant 0 : index
    %0 = vector.load %arg8[%c0, %c0_0] : memref<1x640xf32, #tpu.memory_space<vmem>>, vector<1x256xf32>
    %c0_1 = arith.constant 0 : index
    %c256 = arith.constant 256 : index
    %1 = vector.load %arg8[%c0_1, %c256] : memref<1x640xf32, #tpu.memory_space<vmem>>, vector<1x128xf32>
    %c0_2 = arith.constant 0 : index
    %c384 = arith.constant 384 : index
    %2 = vector.load %arg8[%c0_2, %c384] : memref<1x640xf32, #tpu.memory_space<vmem>>, vector<1x64xf32>
    %c0_3 = arith.constant 0 : index
    %c512 = arith.constant 512 : index
    %3 = vector.load %arg8[%c0_3, %c512] : memref<1x640xf32, #tpu.memory_space<vmem>>, vector<1x5xf32>
    %c0_4 = arith.constant 0 : index
    %c0_5 = arith.constant 0 : index
    %4 = vector.load %arg1[%c0_4, %c0_5] : memref<2x8xf32, #tpu.memory_space<vmem>>, vector<2x8xf32>
    %c0_6 = arith.constant 0 : index
    %c0_7 = arith.constant 0 : index
    %5 = vector.load %arg3[%c0_6, %c0_7] : memref<8x256xf32, #tpu.memory_space<vmem>>, vector<8x256xf32>
    %cst = arith.constant dense<0.000000e+00> : vector<2x256xf32>
    %6 = tpu.matmul %4, %5, %cst {dimension_numbers = #tpu.dot_dimension_numbers<[1], [0], [0], [1], [0, 0, 1, 1], [], []>} : vector<2x8xf32>, vector<8x256xf32>, vector<2x256xf32> -> vector<2x256xf32>
    %c0_8 = arith.constant 0 : index
    %c0_9 = arith.constant 0 : index
    %7 = vector.load %arg2[%c0_8, %c0_9] : memref<2x4xf32, #tpu.memory_space<vmem>>, vector<2x4xf32>
    %c0_10 = arith.constant 0 : index
    %c0_11 = arith.constant 0 : index
    %8 = vector.load %arg4[%c0_10, %c0_11] : memref<4x256xf32, #tpu.memory_space<vmem>>, vector<4x256xf32>
    %cst_12 = arith.constant dense<0.000000e+00> : vector<2x256xf32>
    %9 = tpu.matmul %7, %8, %cst_12 {dimension_numbers = #tpu.dot_dimension_numbers<[1], [0], [0], [1], [0, 0, 1, 1], [], []>} : vector<2x4xf32>, vector<4x256xf32>, vector<2x256xf32> -> vector<2x256xf32>
    %10 = arith.addf %6, %9 : vector<2x256xf32>
    %11 = vector.broadcast %0 : vector<1x256xf32> to vector<2x256xf32>
    %12 = arith.addf %10, %11 : vector<2x256xf32>
    %cst_13 = arith.constant 0.000000e+00 : f32
    %13 = vector.broadcast %cst_13 : f32 to vector<2x256xf32>
    %14 = arith.maximumf %12, %13 : vector<2x256xf32>
    %c0_14 = arith.constant 0 : index
    %c0_15 = arith.constant 0 : index
    %15 = vector.load %arg5[%c0_14, %c0_15] : memref<256x128xf32, #tpu.memory_space<vmem>>, vector<256x128xf32>
    %cst_16 = arith.constant dense<0.000000e+00> : vector<2x128xf32>
    %16 = tpu.matmul %14, %15, %cst_16 {dimension_numbers = #tpu.dot_dimension_numbers<[1], [0], [0], [1], [0, 0, 1, 1], [], []>} : vector<2x256xf32>, vector<256x128xf32>, vector<2x128xf32> -> vector<2x128xf32>
    %17 = vector.broadcast %1 : vector<1x128xf32> to vector<2x128xf32>
    %18 = arith.addf %16, %17 : vector<2x128xf32>
    %cst_17 = arith.constant 0.000000e+00 : f32
    %19 = vector.broadcast %cst_17 : f32 to vector<2x128xf32>
    %20 = arith.maximumf %18, %19 : vector<2x128xf32>
    %c0_18 = arith.constant 0 : index
    %c0_19 = arith.constant 0 : index
    %21 = vector.load %arg6[%c0_18, %c0_19] : memref<128x64xf32, #tpu.memory_space<vmem>>, vector<128x64xf32>
    %cst_20 = arith.constant dense<0.000000e+00> : vector<2x64xf32>
    %22 = tpu.matmul %20, %21, %cst_20 {dimension_numbers = #tpu.dot_dimension_numbers<[1], [0], [0], [1], [0, 0, 1, 1], [], []>} : vector<2x128xf32>, vector<128x64xf32>, vector<2x64xf32> -> vector<2x64xf32>
    %23 = vector.broadcast %2 : vector<1x64xf32> to vector<2x64xf32>
    %24 = arith.addf %22, %23 : vector<2x64xf32>
    %cst_21 = arith.constant 0.000000e+00 : f32
    %25 = vector.broadcast %cst_21 : f32 to vector<2x64xf32>
    %26 = arith.maximumf %24, %25 : vector<2x64xf32>
    %c0_22 = arith.constant 0 : index
    %c0_23 = arith.constant 0 : index
    %27 = vector.load %arg7[%c0_22, %c0_23] : memref<64x5xf32, #tpu.memory_space<vmem>>, vector<64x5xf32>
    %cst_24 = arith.constant dense<0.000000e+00> : vector<2x5xf32>
    %28 = tpu.matmul %26, %27, %cst_24 {dimension_numbers = #tpu.dot_dimension_numbers<[1], [0], [0], [1], [0, 0, 1, 1], [], []>} : vector<2x64xf32>, vector<64x5xf32>, vector<2x5xf32> -> vector<2x5xf32>
    %29 = vector.broadcast %3 : vector<1x5xf32> to vector<2x5xf32>
    %30 = arith.addf %28, %29 : vector<2x5xf32>
    %31 = vector.extract_strided_slice %30 {offsets = [0, 0], sizes = [2, 4], strides = [1, 1]} : vector<2x5xf32> to vector<2x4xf32>
    %32 = vector.extract_strided_slice %30 {offsets = [0, 4], sizes = [2, 1], strides = [1, 1]} : vector<2x5xf32> to vector<2x1xf32>
    %33 = vector.broadcast %32 : vector<2x1xf32> to vector<2x4xf32>
    %34 = arith.addf %33, %31 : vector<2x4xf32>
    %cst_25 = arith.constant dense<0.000000e+00> : vector<2xf32>
    %35 = vector.multi_reduction <add>, %31, %cst_25 [1] : vector<2x4xf32> to vector<2xf32>
    %36 = vector.shape_cast %35 : vector<2xf32> to vector<2x1xf32>
    %cst_26 = arith.constant 4.000000e+00 : f32
    %37 = vector.broadcast %cst_26 : f32 to vector<2x1xf32>
    %38 = arith.divf %36, %37 : vector<2x1xf32>
    %39 = vector.broadcast %38 : vector<2x1xf32> to vector<2x4xf32>
    %40 = arith.subf %34, %39 : vector<2x4xf32>
    %c0_27 = arith.constant 0 : index
    %c0_28 = arith.constant 0 : index
    %41 = vector.load %arg9[%c0_27, %c0_28] : memref<2x4xf32, #tpu.memory_space<vmem>>, vector<2x4xf32>
    tpu.vector_store %arg9[%c0_27, %c0_28], %40 {strides = array<i32>} : memref<2x4xf32, #tpu.memory_space<vmem>>, vector<2x4xf32>,
    return
  }
  func.func @transform_0(%arg0: i32) -> (i32, i32) {
    %c0_i32 = arith.constant 0 : i32
    %c0_i32_0 = arith.constant 0 : i32
    return %arg0, %c0_i32 : i32, i32
  }
  func.func @transform_1(%arg0: i32) -> (i32, i32) {
    %c0_i32 = arith.constant 0 : i32
    %c0_i32_0 = arith.constant 0 : i32
    return %arg0, %c0_i32 : i32, i32
  }
  func.func @transform_2(%arg0: i32) -> (i32, i32) {
    %c0_i32 = arith.constant 0 : i32
    %c0_i32_0 = arith.constant 0 : i32
    %c0_i32_1 = arith.constant 0 : i32
    return %c0_i32, %c0_i32_0 : i32, i32
  }
  func.func @transform_3(%arg0: i32) -> (i32, i32) {
    %c0_i32 = arith.constant 0 : i32
    %c0_i32_0 = arith.constant 0 : i32
    %c0_i32_1 = arith.constant 0 : i32
    return %c0_i32, %c0_i32_0 : i32, i32
  }
  func.func @transform_4(%arg0: i32) -> (i32, i32) {
    %c0_i32 = arith.constant 0 : i32
    %c0_i32_0 = arith.constant 0 : i32
    %c0_i32_1 = arith.constant 0 : i32
    return %c0_i32, %c0_i32_0 : i32, i32
  }
  func.func @transform_5(%arg0: i32) -> (i32, i32) {
    %c0_i32 = arith.constant 0 : i32
    %c0_i32_0 = arith.constant 0 : i32
    %c0_i32_1 = arith.constant 0 : i32
    return %c0_i32, %c0_i32_0 : i32, i32
  }
  func.func @transform_6(%arg0: i32) -> (i32, i32) {
    %c0_i32 = arith.constant 0 : i32
    %c0_i32_0 = arith.constant 0 : i32
    %c0_i32_1 = arith.constant 0 : i32
    return %c0_i32, %c0_i32_0 : i32, i32
  }
  func.func @transform_7(%arg0: i32) -> (i32, i32) {
    %c0_i32 = arith.constant 0 : i32
    %c0_i32_0 = arith.constant 0 : i32
    %c0_i32_1 = arith.constant 0 : i32
    return %c0_i32, %c0_i32_0 : i32, i32
  }
  func.func @transform_8(%arg0: i32) -> (i32, i32) {
    %c0_i32 = arith.constant 0 : i32
    %c0_i32_0 = arith.constant 0 : i32
    return %arg0, %c0_i32 : i32, i32
  }
}

</mosaic_0001>

<bundles_post_ra>
// kernel: tpu_custom_call.1
= control target key start
LH: loop header
LB: loop body
LE: loop exit
PB: predicated region body
PF: predicated region fallthrough
CT: control target
= control target key end

     0   :  { %13 = vsyncpa [#allocation3], 0  ;;  %s1166_s0 = inlined_call_operand.hbm [shape: f32[2,8], index: 0, kind: input, shape index: {}]   ;;  %s1167_s1 = inlined_call_operand.hbm [shape: f32[2,4], index: 1, kind: input, shape index: {}]   ;;  %s1168_s2 = inlined_call_operand.vmem [shape: f32[8,256], index: 2, kind: input, shape index: {}]   ;;  %s1169_s3 = inlined_call_operand.hbm [shape: f32[4,256], index: 3, kind: input, shape index: {}]   ;;  %s1170_s4 = inlined_call_operand.vmem [shape: f32[256,128], index: 4, kind: input, shape index: {}]   ;;  %s1171_s5 = inlined_call_operand.vmem [shape: f32[128,64], index: 5, kind: input, shape index: {}]   ;;  %s1172_s6 = inlined_call_operand.vmem [shape: f32[64,5], index: 6, kind: input, shape index: {}]   ;;  %s1173_s7 = inlined_call_operand.vmem [shape: f32[1,640], index: 7, kind: input, shape index: {}]   ;;  %s1174_s8 = inlined_call_operand.hbm [shape: f32[2,4], index: 8, kind: output, shape index: {}]  }
   0x1   :  { %14 = vsyncpa [#allocation6], 0 }
   0x2   :  { %15 = vsyncpa [#allocation4], 0  ;;  %s863_s27 = smov [#allocation5]   ;;  %s864_s29 = smov [#allocation2]  }
   0x3   :  { %s32_s28 = sshll.u32 %s863_s27, 4  ;;  %s22_s30 = sshll.u32 %s864_s29, 4  ;;  %s33_s28 = int_to_ptr.vmem [resolvable:$true] %s32_s28  ;;  %s23_s30 = int_to_ptr.vmem [resolvable:$true] %s22_s30 }
   0x4   :  { %s769_s11 = scalar_lea.hbm %s1167_s1, 32 }
   0x5   :  { %p770_p0 = scmp.ne.s32.totalorder %s1167_s1, %s769_s11  ;;  %p773_p1 = scmp.lt.u32.totalorder %s769_s11, %s1167_s1 }
   0x7   :  { %p775_p2 = pnand %p773_p1, %p770_p0 }
   0x9   :  { %778 = shalt.err (!%p775_p2)
}
   0xa   :  { %s779_s16 = scalar_lea.vmem %s33_s28, 32  ;;  %p784_p4 = scmp.lt.s32.totalorder %s33_s28, %s33_s28 }
   0xb   :  { %p780_p3 = scmp.ne.s32.totalorder %s33_s28, %s779_s16  ;;  %p785_p5 = scmp.lt.s32.totalorder %s779_s16, %s779_s16 }
   0xd   :  { %p786_p6 = por %p785_p5, %p784_p4 }
   0xf   :  { %p787_p7 = pnand %p786_p6, %p780_p3 }
  0x11   :  { %790 = shalt.err (!%p787_p7)
}
  0x12   :  { %35 = dma.hbm_to_vmem [thread:$0]  %s1167_s1, 32, %s33_s28, [#allocation6]  }
  0x13   :  { %s791_s21 = scalar_lea.hbm %s1166_s0, 32 }
  0x14   :  { %p792_p8 = scmp.ne.s32.totalorder %s1166_s0, %s791_s21  ;;  %p795_p9 = scmp.lt.u32.totalorder %s791_s21, %s1166_s0 }
  0x16   :  { %p797_p10 = pnand %p795_p9, %p792_p8 }
  0x18   :  { %800 = shalt.err (!%p797_p10)
}
  0x19   :  { %s801_s26 = scalar_lea.vmem %s23_s30, 32  ;;  %p806_p12 = scmp.lt.s32.totalorder %s23_s30, %s23_s30 }
  0x1a   :  { %p802_p11 = scmp.ne.s32.totalorder %s23_s30, %s801_s26  ;;  %p807_p13 = scmp.lt.s32.totalorder %s801_s26, %s801_s26 }
  0x1c   :  { %p808_p0 = por %p807_p13, %p806_p12 }
  0x1e   :  { %p809_p1 = pnand %p808_p0, %p802_p11 }
  0x20   :  { %812 = shalt.err (!%p809_p1)
}
  0x21   :  { %25 = dma.hbm_to_vmem [thread:$0]  %s1166_s0, 32, %s23_s30, [#allocation3]  }
  0x22   :  { %s865_s28 = smov [#allocation7]   ;;  %s813_s11 = scalar_lea.hbm %s1169_s3, 128 }
  0x23   :  { %s44_s29 = sshll.u32 %s865_s28, 4  ;;  %p814_p2 = scmp.ne.s32.totalorder %s1169_s3, %s813_s11  ;;  %s45_s29 = int_to_ptr.vmem [resolvable:$true] %s44_s29 }
  0x24   :  { %p817_p3 = scmp.lt.u32.totalorder %s813_s11, %s1169_s3 }
  0x26   :  { %p819_p4 = pnand %p817_p3, %p814_p2 }
  0x28   :  { %822 = shalt.err (!%p819_p4)
}
  0x29   :  { %s823_s16 = scalar_lea.vmem %s45_s29, 128  ;;  %p828_p6 = scmp.lt.s32.totalorder %s45_s29, %s45_s29 }
  0x2a   :  { %p824_p5 = scmp.ne.s32.totalorder %s45_s29, %s823_s16  ;;  %p829_p7 = scmp.lt.s32.totalorder %s823_s16, %s823_s16 }
  0x2c   :  { %p830_p8 = por %p829_p7, %p828_p6 }
  0x2e   :  { %p831_p9 = pnand %p830_p8, %p824_p5 }
  0x30   :  { %834 = shalt.err (!%p831_p9)
}
  0x31   :  { %47 = dma.hbm_to_vmem [thread:$0]  %s1169_s3, 128, %s45_s29, [#allocation6]  }
  0x32   :  { %857 = dma.done.wait [#allocation3], 32  }
  0x33   :  { %858 = vsyncadd [#allocation3], 4294967264 }
  0x34   :  { %859 = dma.done.wait [#allocation6], 160  }
  0x35   :  { %860 = vsyncadd [#allocation6], 4294967136  ;;  %v866_v0 = vmov 0.0   ;;  %v73_v1 = vld [vmem:[#allocation7] sm:$0xff]  ;;  %vm80_vm0 = vcmask 1043456   ;;  %vm76_vm1 = vcmask 31744  }
  0x36   :  { %149 = vmatprep.mubr.f32.mxu0 %v866_v0  ;;  %v75_v2 = vcombine.high %v73_v1, %v73_v1  ;;  %v72_v3 = vld [vmem:[#allocation5] sm:$0x3]  ;;  %v71_v4 = vld [vmem:[%s1168_s2 + $0x8] sm:$0xff]  ;;  %v264_v11 = vld [vmem:[%s1170_s4 + $0x90] sm:$0xff]  ;;  %vm156_vm2 = vcmask 64512   ;;  %v867_v58 = vmov 0.0|0.0  }
  0x37   :  { %v262_v5 = vld [vmem:[%s1170_s4 + $0x80] sm:$0xff]  ;;  %v263_v6 = vld [vmem:[%s1170_s4 + $0x88] sm:$0xff]  ;;  %v265_v12 = vld [vmem:[%s1170_s4 + $0x98] sm:$0xff]  ;;  %vm868_vm3 = vmmov 0   ;;  %vm462_vm4 = vcmask 523264   ;;  %vm542_vm5 = vcmask 25600  }
  0x38   :  { %v246_v7 = vld [vmem:[%s1170_s4] sm:$0xff]  ;;  %v247_v8 = vld [vmem:[%s1170_s4 + $0x8] sm:$0xff]  ;;  %566 = vmatprep.subr.msk.mxu0 %vm80_vm0, %v75_v2  ;;  %v689_v10 = vpack.c.bf16 %v263_v6, %v262_v5  ;;  %v693_v14 = vpack.c.bf16 %v265_v12, %v264_v11  ;;  %v248_v15 = vld [vmem:[%s1170_s4 + $0x10] sm:$0xff]  ;;  %v232_v11 = vlaneseq }
  0x39   :  { %v70_v9 = vld [vmem:[%s1168_s2] sm:$0xff]  ;;  %567 = vmatpush1.msk.msra.mxu0 %vm80_vm0, %v73_v1  ;;  %v691_v13 = vpack.c.bf16 %v247_v8, %v246_v7  ;;  %v249_v16 = vld [vmem:[%s1170_s4 + $0x18] sm:$0xff]  ;;  %v267_v18 = vld [vmem:[%s1170_s4 + $0xa8] sm:$0xff] }
  0x3a   :  { %568 = vmatmul.mubr.msk.f32.vlgmr.msra.gmra.mrb[0].mxu0 %vm76_vm1, %v72_v3  ;;  %160 = vmatprep.subr.mxu0 %v71_v4  ;;  %v266_v17 = vld [vmem:[%s1170_s4 + $0xa0] sm:$0xff]  ;;  %v695_v19 = vpack.c.bf16 %v249_v16, %v248_v15  ;;  %v251_v22 = vld [vmem:[%s1170_s4 + $0x28] sm:$0xff]  ;;  %v268_v24 = vld [vmem:[%s1170_s4 + $0xb0] sm:$0xff]  ;;  %v233_v12 = vshrl.u32 %v232_v11, 7 }
  0x3b   :  { %161 = vmatpush1.msra.mxu0 %v70_v9  ;;  %224 = vmatprep.mubr.f32.mxu0 %v866_v0  ;;  %v697_v20 = vpack.c.bf16 %v267_v18, %v266_v17  ;;  %v250_v21 = vld [vmem:[%s1170_s4 + $0x20] sm:$0xff]  ;;  %v269_v25 = vld [vmem:[%s1170_s4 + $0xb8] sm:$0xff]  ;;  %v252_v28 = vld [vmem:[%s1170_s4 + $0x30] sm:$0xff] }
  0x3c   :  { %690 = vmatprep.subr.bf16.mxu1 %v689_v10  ;;  %v69_v23 = vld [vmem:[#allocation2] sm:$0x3]  ;;  %v699_v26 = vpack.c.bf16 %v251_v22, %v250_v21  ;;  %v701_v27 = vpack.c.bf16 %v269_v25, %v268_v24  ;;  %v253_v29 = vld [vmem:[%s1170_s4 + $0x38] sm:$0xff]  ;;  %v271_v31 = vld [vmem:[%s1170_s4 + $0xc8] sm:$0xff]  ;;  %721 = vmatprep.subr.bf16.mxu0 %v867_v58  ;;  %v238_v15 = vsub.s32 1, %v233_v12 }
  0x3d   :  { %692 = vmatpush3.bf16.msra.mxu1 %v691_v13  ;;  %v270_v30 = vld [vmem:[%s1170_s4 + $0xc0] sm:$0xff]  ;;  %v703_v32 = vpack.c.bf16 %v253_v29, %v252_v28  ;;  %v255_v35 = vld [vmem:[%s1170_s4 + $0x48] sm:$0xff]  ;;  %v272_v36 = vld [vmem:[%s1170_s4 + $0xd0] sm:$0xff]  ;;  %v234_v13 = vsub.s32 0, %v233_v12 }
  0x3e   :  { %694 = vmatprep.subr.bf16.mxu1 %v693_v14  ;;  %v705_v33 = vpack.c.bf16 %v271_v31, %v270_v30  ;;  %v254_v34 = vld [vmem:[%s1170_s4 + $0x40] sm:$0xff]  ;;  %v273_v37 = vld [vmem:[%s1170_s4 + $0xd8] sm:$0xff]  ;;  %v256_v40 = vld [vmem:[%s1170_s4 + $0x50] sm:$0xff] }
  0x3f   :  { %v707_v38 = vpack.c.bf16 %v255_v35, %v254_v34  ;;  %v709_v39 = vpack.c.bf16 %v273_v37, %v272_v36  ;;  %v257_v41 = vld [vmem:[%s1170_s4 + $0x58] sm:$0xff]  ;;  %v274_v42 = vld [vmem:[%s1170_s4 + $0xe0] sm:$0xff]  ;;  %v275_v43 = vld [vmem:[%s1170_s4 + $0xe8] sm:$0xff] }
  0x40   :  { %v711_v44 = vpack.c.bf16 %v257_v41, %v256_v40  ;;  %v713_v45 = vpack.c.bf16 %v275_v43, %v274_v42  ;;  %v258_v46 = vld [vmem:[%s1170_s4 + $0x60] sm:$0xff]  ;;  %v259_v47 = vld [vmem:[%s1170_s4 + $0x68] sm:$0xff]  ;;  %v276_v49 = vld [vmem:[%s1170_s4 + $0xf0] sm:$0xff] }
  0x41   :  { %696 = vmatpush3.bf16.msra.mxu1 %v695_v19  ;;  %v715_v48 = vpack.c.bf16 %v259_v47, %v258_v46  ;;  %v277_v50 = vld [vmem:[%s1170_s4 + $0xf8] sm:$0xff]  ;;  %v260_v52 = vld [vmem:[%s1170_s4 + $0x70] sm:$0xff]  ;;  %v355_v55 = vld [vmem:[%s1171_s5] sm:$0xff] }
  0x42   :  { %569 = vmatmul.mubr.msk.f32.vlgmr.msra.gmra.mrb[0].mxu0 %vm156_vm2, %v69_v23  ;;  %698 = vmatprep.subr.bf16.mxu1 %v697_v20  ;;  %v717_v51 = vpack.c.bf16 %v277_v50, %v276_v49  ;;  %v261_v53 = vld [vmem:[%s1170_s4 + $0x78] sm:$0xff]  ;;  %v356_v56 = vld [vmem:[%s1171_s5 + $0x8] sm:$0xff]  ;;  %v357_v57 = vld [vmem:[%s1171_s5 + $0x10] sm:$0xff] }
  0x43   :  { %v719_v54 = vpack.c.bf16 %v261_v53, %v260_v52  ;;  %v722_v59 = vpack.c.bf16 %v356_v56, %v355_v55  ;;  %v358_v60 = vld [vmem:[%s1171_s5 + $0x18] sm:$0xff]  ;;  %v359_v62 = vld [vmem:[%s1171_s5 + $0x20] sm:$0xff]  ;;  %v360_v63 = vld [vmem:[%s1171_s5 + $0x28] sm:$0xff]  ;;  %667 = vmatprep.mubr.msk.f32.mxu0 %vm868_vm3, %v866_v0  ;;  %v869_v52 = vmov 4  }
  0x44   :  { %v725_v61 = vpack.c.bf16 %v358_v60, %v357_v57  ;;  %v728_v1 = vpack.c.bf16 %v360_v63, %v359_v62  ;;  %v361_v2 = vld [vmem:[%s1171_s5 + $0x30] sm:$0xff]  ;;  %v362_v3 = vld [vmem:[%s1171_s5 + $0x38] sm:$0xff]  ;;  %v363_v5 = vld [vmem:[%s1171_s5 + $0x40] sm:$0xff]  ;;  %767 = vset.pattern.permute.xlu0 %v869_v52 }
  0x45   :  { %700 = vmatpush3.bf16.msra.mxu1 %v699_v26  ;;  %723 = vmatpush3.bf16.msra.mxu0 %v722_v59  ;;  %v731_v4 = vpack.c.bf16 %v362_v3, %v361_v2  ;;  %v364_v6 = vld [vmem:[%s1171_s5 + $0x48] sm:$0xff]  ;;  %v365_v8 = vld [vmem:[%s1171_s5 + $0x50] sm:$0xff]  ;;  %v366_v9 = vld [vmem:[%s1171_s5 + $0x58] sm:$0xff] }
  0x46   :  { %702 = vmatprep.subr.bf16.mxu1 %v701_v27  ;;  %724 = vmatprep.subr.bf16.mxu0 %v867_v58  ;;  %v734_v7 = vpack.c.bf16 %v364_v6, %v363_v5  ;;  %v737_v10 = vpack.c.bf16 %v366_v9, %v365_v8  ;;  %v65_v14 = vld [vmem:[%s1173_s7] sm:$0x3]  ;;  %v368_v25 = vld [vmem:[%s1171_s5 + $0x68] sm:$0xff]  ;;  %v369_v27 = vld [vmem:[%s1171_s5 + $0x70] sm:$0xff] }
  0x47   :  { %v235_v16 = vrot.slane %v65_v14, %v234_v13  ;;  %v239_v17 = vrot.slane %v65_v14, %v238_v15  ;;  %v367_v24 = vld [vmem:[%s1171_s5 + $0x60] sm:$0xff]  ;;  %v370_v28 = vld [vmem:[%s1171_s5 + $0x78] sm:$0xff]  ;;  %v449_v31 = vld [vmem:[%s1172_s6 + $0x8] sm:$0xff] }
  0x48   :  { %v740_v26 = vpack.c.bf16 %v368_v25, %v367_v24  ;;  %v743_v29 = vpack.c.bf16 %v370_v28, %v369_v27  ;;  %v448_v30 = vld [vmem:[%s1172_s6] sm:$0xff]  ;;  %v451_v34 = vld [vmem:[%s1172_s6 + $0x18] sm:$0xff]  ;;  %v453_v36 = vld [vmem:[%s1172_s6 + $0x28] sm:$0xff] }
  0x49   :  { %704 = vmatpush3.bf16.msra.mxu1 %v703_v32  ;;  %726 = vmatpush3.bf16.msra.mxu0 %v725_v61  ;;  %v450_v32 = vld [vmem:[%s1172_s6 + $0x10] sm:$0xff]  ;;  %v571_v47 = vld [vmem:[%s1173_s7 + $0x3] ss:$0 sm:$0xff]  ;;  %v572_v53 = vld [vmem:[%s1173_s7 + $0x4] ss:$0 sm:$0xff] }
  0x4a   :  { %706 = vmatprep.subr.bf16.mxu1 %v705_v33  ;;  %727 = vmatprep.subr.bf16.mxu0 %v867_v58  ;;  %v746_v33 = vpack.c.bf16 %v449_v31, %v448_v30  ;;  %v749_v35 = vpack.c.bf16 %v451_v34, %v450_v32 }
  0x4d   :  { %708 = vmatpush3.bf16.msra.mxu1 %v707_v38  ;;  %729 = vmatpush3.bf16.msra.mxu0 %v728_v1 }
  0x4e   :  { %710 = vmatprep.subr.bf16.mxu1 %v709_v39  ;;  %730 = vmatprep.subr.bf16.mxu0 %v867_v58  ;;  %v570_v39 = vld [vmem:[%s1173_s7 + $0x2] ss:$0 sm:$0xff] }
  0x51   :  { %712 = vmatpush3.bf16.msra.mxu1 %v711_v44  ;;  %732 = vmatpush3.bf16.msra.mxu0 %v731_v4  ;;  %v454_v44 = vld [vmem:[%s1172_s6 + $0x30] sm:$0xff] }
  0x52   :  { %714 = vmatprep.subr.bf16.mxu1 %v713_v45  ;;  %733 = vmatprep.subr.bf16.mxu0 %v867_v58  ;;  %v455_v45 = vld [vmem:[%s1172_s6 + $0x38] sm:$0xff] }
  0x53   :  { %v755_v46 = vpack.c.bf16 %v455_v45, %v454_v44 }
  0x55   :  { %716 = vmatpush3.bf16.msra.mxu1 %v715_v48  ;;  %735 = vmatpush3.bf16.msra.mxu0 %v734_v7 }
  0x56   :  { %718 = vmatprep.subr.bf16.mxu1 %v717_v51  ;;  %736 = vmatprep.subr.bf16.mxu0 %v867_v58 }
  0x59   :  { %720 = vmatpush3.bf16.msra.mxu1 %v719_v54  ;;  %738 = vmatpush3.bf16.msra.mxu0 %v737_v10 }
  0x5a   :  { %745 = vmatprep.subr.bf16.mxu1 %v867_v58  ;;  %739 = vmatprep.subr.bf16.mxu0 %v867_v58 }
  0x5d   :  { %741 = vmatpush3.bf16.msra.mxu0 %v740_v26 }
  0x5e   :  { %742 = vmatprep.subr.bf16.mxu0 %v867_v58 }
  0x61   :  { %744 = vmatpush3.bf16.msra.mxu0 %v743_v29 }
 0x115   :  { %v226_v18 = vpop.f32.mrb[0].mxu0 }
 0x116   :  { %v242_v19 = vadd.f32 %v235_v16, %v226_v18  ;;  %v228_v20 = vpop.f32.mrb[1].mxu0 }
 0x117   :  { %v243_v21 = vadd.f32 %v239_v17, %v228_v20 }
 0x118   :  { %v244_v23 = vmax.f32 %v242_v19, 0.0 }
 0x119   :  { %v245_v22 = vmax.f32 %v243_v21, 0.0 }
 0x11b   :  { %348 = vmatprep.mubr.f32.mxu1 %v245_v22 }
 0x11c   :  { %349 = vmatmul.mubr.f32.vlgmr.msra.gmra.mrb[0].mxu1 %v244_v23 }
 0x11d   :  { %686 = vmatprep.mubr.msk.f32.mxu1 %vm868_vm3, %v866_v0  ;;  %747 = vmatpush3.bf16.msra.mxu1 %v746_v33  ;;  %v452_v0 = vld [vmem:[%s1172_s6 + $0x20] sm:$0xff]  ;;  %s870_s6 = smov [#allocation8]  }
 0x11e   :  { %748 = vmatprep.subr.bf16.mxu1 %v867_v58  ;;  %v752_v37 = vpack.c.bf16 %v453_v36, %v452_v0  ;;  %s556_s11 = sshll.u32 %s870_s6, 4  ;;  %s557_s11 = int_to_ptr.vmem [resolvable:$true] %s556_s11 }
 0x11f   :  { %s835_s12 = scalar_lea.vmem %s557_s11, 32  ;;  %p840_p11 = scmp.lt.s32.totalorder %s557_s11, %s557_s11 }
 0x120   :  { %p836_p10 = scmp.ne.s32.totalorder %s557_s11, %s835_s12  ;;  %p841_p12 = scmp.lt.s32.totalorder %s835_s12, %s835_s12 }
 0x121   :  { %750 = vmatpush3.bf16.msra.mxu1 %v749_v35 }
 0x122   :  { %751 = vmatprep.subr.bf16.mxu1 %v867_v58  ;;  %p842_p13 = por %p841_p12, %p840_p11 }
 0x124   :  { %p843_p0 = pnand %p842_p13, %p836_p10 }
 0x125   :  { %753 = vmatpush3.bf16.msra.mxu1 %v752_v37 }
 0x126   :  { %754 = vmatprep.subr.bf16.mxu1 %v867_v58 }
 0x129   :  { %756 = vmatpush3.bf16.msra.mxu1 %v755_v46 }
 0x1ef   :  { %v606_v38 = vpop.f32.mrb[0].mxu1 }
 0x1f0   :  { %v607_v40 = vpop.f32.mrb[1].mxu1 }
 0x1f1   :  { %v608_v41 = vadd.f32 %v607_v40, %v606_v38 }
 0x1f3   :  { %v351_v42 = vadd.f32 %v608_v41, %v570_v39 }
 0x1f5   :  { %v354_v43 = vmax.f32 %v351_v42, 0.0 }
 0x1f7   :  { %668 = vmatmul.mubr.f32.vlgmr.msra.gmra.mrb[2].mxu0 %v354_v43 }
 0x2ca   :  { %v443_v48 = vpop.f32.mrb[2].mxu0 }
 0x2cb   :  { %v444_v49 = vadd.f32 %v571_v47, %v443_v48  ;;  %v669_v50 = vpop.f32.mrb[3].mxu0 }
 0x2cd   :  { %v447_v51 = vmax.f32 %v444_v49, 0.0 }
 0x2cf   :  { %687 = vmatmul.mubr.msk.f32.vlgmr.msra.gmra.mrb[2].mxu1 %vm462_vm4, %v447_v51 }
 0x3a2   :  { %v532_v54 = vpop.f32.mrb[2].mxu1 }
 0x3a3   :  { %v533_v55 = vadd.f32 %v572_v53, %v532_v54  ;;  %v688_v56 = vpop.f32.mrb[3].mxu1 }
 0x3a5   :  { %v543_v57 = vsel %vm542_vm5, %v533_v55, 0.0 }
 0x3a6   :  { %544 = vadd.xlane.f32.xlu0 %v543_v57 }
 0x3bc   :  { %538 = vperm.xlu0 %767, %v533_v55  }
 0x433   :  { %v545_v58 = vpop.xlane.xlu0 %544 }
 0x434   :  { %v547_v60 = vmul.f32 0.25, %v545_v58 }
 0x43b   :  { %v539_v59 = vpop.permute.xlu0 %538 }
 0x43c   :  { %v541_v61 = vadd.f32 %v539_v59, %v533_v55 }
 0x43e   :  { %v548_v62 = vsub.f32 %v541_v61, %v547_v60 }
 0x440   :  { %549 = vst.msk [vmem:[#allocation8] sm:$0x3] %vm542_vm5, %v548_v62 }
 0x441   :  { %846 = shalt.err (!%p843_p0)
}
 0x442   :  { %s847_s13 = scalar_lea.hbm %s1174_s8, 32 }
 0x443   :  { %p848_p1 = scmp.ne.s32.totalorder %s1174_s8, %s847_s13  ;;  %p851_p2 = scmp.lt.u32.totalorder %s847_s13, %s1174_s8 }
 0x445   :  { %p853_p3 = pnand %p851_p2, %p848_p1 }
 0x447   :  { %856 = shalt.err (!%p853_p3)
}
 0x448   :  { %559 = dma.vmem_to_hbm [thread:$0]  %s557_s11, 32, %s1174_s8, [#allocation4]  }
 0x449   :  { %861 = dma.done.wait [#allocation4], 32  }
 0x44a   :  { %862 = vsyncadd [#allocation4], 4294967264 }
 0x44b   :  { %563 = vsyncpa [#allocation3], 1 }
 0x44c   :  { %564 = vsyncpa [#allocation6], 1 }
 0x44d   :  { %565 = vsyncpa [#allocation4], 1 }

</bundles_post_ra>
